<compile_context>
chip_gen: v5e
topology: v5e:2x2
jax: 0.10.0
libtpu: 0.0.40
codegen_flags: <defaults>
</compile_context>

<pallas_src>
import functools

import jax
import jax.numpy as jnp
from jax.experimental import pallas as pl
from jax.experimental.pallas import tpu as pltpu

_LANES = 128


def conv_block_kernel(p_ref, w_ref, o_ref, *, n_pool, m_out):
    """Fused conv + maxpool + ReLU; whole batch in one invocation.

    p_ref: (K+1, n_pool * m_out)  im2col patches + constant-1.0 bias row,
                                  columns ordered [pool_pos, n, ho, wo]
    w_ref: (Cout, K+1)            conv weights with bias as last column
    o_ref: (Cout, m_out)          pooled + activated output, m_out = N*Ho*Wo
    """
    # One MXU matmul; bias is folded in via the constant-1.0 row of p_ref.
    y = jnp.dot(w_ref[...], p_ref[...],
                preferred_element_type=jnp.float32)       # (Cout, n_pool*m_out)

    # MaxPool2d: columns are grouped by pool-window position, so pooling is an
    # elementwise max across n_pool lane-aligned (128-multiple) static slices
    # -- pure VPU work, no XLU relayouts.
    pooled = y[:, 0:m_out]
    for p in range(1, n_pool):
        pooled = jnp.maximum(pooled, y[:, p * m_out:(p + 1) * m_out])

    # ReLU; full-lane unmasked store (a single (8,128) vreg at the demo shape).
    o_ref[...] = jnp.maximum(pooled, 0.0).astype(o_ref.dtype)


def conv_block_native(x_nchw, w_oihw, bias, *, stride, padding,
                      pool_k, pool_s, pool_p):
    """ConvBlock returning the kernel-native (Cout, N*Ho*Wo) layout."""
    # TODO(synk): maxpool with pool_stride != pool_kernel or pool_padding != 0
    # is not implemented (the pool-window column grouping assumes tiling pools).
    assert pool_p == 0 and pool_k == pool_s, "unsupported pooling config"

    N, Cin, H, W = x_nchw.shape
    Cout, Cin_w, KH, KW = w_oihw.shape
    assert Cin_w == Cin

    Hp, Wp = H + 2 * padding, W + 2 * padding
    conv_h = (Hp - KH) // stride + 1
    conv_w = (Wp - KW) // stride + 1
    assert conv_h % pool_k == 0 and conv_w % pool_k == 0
    Ho, Wo = conv_h // pool_k, conv_w // pool_k

    K = Cin * KH * KW           # contraction depth (before the bias row)
    P = pool_k * pool_k         # pool-window positions
    Mo = N * Ho * Wo            # batch folded into the lane (M) dimension
    # Keep the lane dimension a multiple of 128 so pool maxes and the output
    # store stay full-lane (Mo is exactly 128 at the demo shape -> no pad).
    Mo_pad = ((Mo + _LANES - 1) // _LANES) * _LANES

    # ---- im2col in ONE HLO (identity-kernel grouped conv) -------------------
    # Feature dim of the result is ordered (c, kh, kw), matching
    # w_oihw.reshape(Cout, Cin*KH*KW).
    # TODO(synk): alternatively fuse these producers into the Pallas input DMA
    # via CompilerParams(allow_input_fusion=...) and compare with an xprof trace.
    patches = jax.lax.conv_general_dilated_patches(
        x_nchw, filter_shape=(KH, KW),
        window_strides=(stride, stride),
        padding=[(padding, padding), (padding, padding)],
        dimension_numbers=("NCHW", "OIHW", "NCHW"))      # (N, K, conv_h, conv_w)

    # Group columns by pool-window position: (K, ph, pw, N, Ho, Wo).
    pat = patches.reshape(N, K, Ho, pool_k, Wo, pool_k)
    pat = jnp.transpose(pat, (1, 3, 5, 0, 2, 4))
    pat = pat.reshape(K, P, Mo)
    if Mo_pad != Mo:
        pat = jnp.pad(pat, ((0, 0), (0, 0), (0, Mo_pad - Mo)))
    pat = pat.reshape(K, P * Mo_pad)

    # Fold the bias into the matmul: constant-1.0 row in the patches, bias as
    # the last weight column. K=36 already pads to 40 sublanes in VMEM, so the
    # extra contraction row is free on the MXU.
    pat_aug = jnp.concatenate(
        [pat, jnp.ones((1, P * Mo_pad), pat.dtype)], axis=0)        # (K+1, P*Mo_pad)
    w_aug = jnp.concatenate(
        [w_oihw.reshape(Cout, K).astype(pat.dtype),
         bias.reshape(Cout, 1).astype(pat.dtype)], axis=1)          # (Cout, K+1)

    kernel = functools.partial(conv_block_kernel, n_pool=P, m_out=Mo_pad)

    flops = 2 * Cout * (K + 1) * (P * Mo_pad)
    bytes_accessed = 4 * ((K + 1) * P * Mo_pad + Cout * (K + 1) + Cout * Mo_pad)

    # No grid: single invocation, whole (tiny) operands resident in VMEM.
    # TODO(synk): for large N*Ho*Wo, tile Mo over a "parallel" grid axis
    # (multiple-of-128 tiles; shards across v7x's 2 TensorCores) and size tiles
    # for v7x's 64 MiB VMEM via pltpu.CompilerParams(vmem_limit_bytes=...).
    out2d = pl.pallas_call(
        kernel,
        out_shape=jax.ShapeDtypeStruct((Cout, Mo_pad), x_nchw.dtype),
        in_specs=[
            pl.BlockSpec(memory_space=pltpu.MemorySpace.VMEM),
            pl.BlockSpec(memory_space=pltpu.MemorySpace.VMEM),
        ],
        out_specs=pl.BlockSpec(memory_space=pltpu.MemorySpace.VMEM),
        cost_estimate=pl.CostEstimate(flops=flops, transcendentals=0,
                                      bytes_accessed=bytes_accessed),
    )(pat_aug, w_aug)

    if Mo_pad != Mo:
        out2d = out2d[:, :Mo]
    return out2d, (N, Cout, Ho, Wo)


def conv_block(x_nchw, w_oihw, bias, *, stride, padding, pool_k, pool_s, pool_p):
    """ConvBlock with standard NCHW output (network-boundary layout only).

    When chaining blocks, consume conv_block_native's (Cout, N*Ho*Wo) output
    directly (permute the downstream weights offline) and skip this transpose.
    """
    out2d, (N, Cout, Ho, Wo) = conv_block_native(
        x_nchw, w_oihw, bias, stride=stride, padding=padding,
        pool_k=pool_k, pool_s=pool_s, pool_p=pool_p)
    return jnp.transpose(out2d.reshape(Cout, N, Ho, Wo), (1, 0, 2, 3))


def reference_conv_block(x_nchw, w_oihw, bias, *, stride, padding,
                         pool_k, pool_s):
    y = jax.lax.conv_general_dilated(
        x_nchw, w_oihw,
        window_strides=(stride, stride),
        padding=[(padding, padding), (padding, padding)],
        dimension_numbers=("NCHW", "OIHW", "NCHW"))
    y = y + bias[None, :, None, None]
    y = jax.lax.reduce_window(
        y, -jnp.inf, jax.lax.max,
        window_dimensions=(1, 1, pool_k, pool_k),
        window_strides=(1, 1, pool_s, pool_s),
        padding="VALID")
    return jnp.maximum(y, 0.0)


if __name__ == "__main__":
    # ConvBlock(input_size=4, output_size=8, kernel_size=3, stride=1, padding=1,
    #           maxpool_kernel_size=2, maxpool_stride=2, maxpool_padding=0,
    #           activation='ReLU')
    N, Cin, H, W = 2, 4, 16, 16
    Cout, KH, KW = 8, 3, 3
    stride, padding = 1, 1
    pool_k, pool_s, pool_p = 2, 2, 0

    key = jax.random.PRNGKey(0)
    kx, kw, kb = jax.random.split(key, 3)

    x = jax.random.normal(kx, (N, Cin, H, W), dtype=jnp.float32)
    fan_in = Cin * KH * KW
    bound = 1.0 / (fan_in ** 0.5)   # mimic PyTorch Conv2d default init range
    w = jax.random.uniform(kw, (Cout, Cin, KH, KW), jnp.float32, -bound, bound)
    b = jax.random.uniform(kb, (Cout,), jnp.float32, -bound, bound)

    # One jitted XLA program: patch-build HLOs + Pallas kernel + boundary relayout.
    fused = jax.jit(functools.partial(
        conv_block, stride=stride, padding=padding,
        pool_k=pool_k, pool_s=pool_s, pool_p=pool_p))
    out = jax.block_until_ready(fused(x, w, b))

    ref = reference_conv_block(x, w, b, stride=stride, padding=padding,
                               pool_k=pool_k, pool_s=pool_s)
    assert out.shape == ref.shape == (N, Cout, H // pool_s, W // pool_s)
    assert jnp.allclose(out, ref, atol=1e-4, rtol=1e-4), "mismatch vs reference"

    print("KERNEL_OK")
</pallas_src>

<mosaic_0001>
module attributes {stable_mosaic.version = 11 : i64} {
  func.func @conv_block_kernel(%arg0: memref<37x512xf32, #tpu.memory_space<vmem>>, %arg1: memref<8x37xf32, #tpu.memory_space<vmem>>, %arg2: memref<8x128xf32, #tpu.memory_space<vmem>>) attributes {dimension_semantics = [], scalar_prefetch = 0 : i64, scratch_operands = 0 : i64, tpu.core_type = #tpu.core_type<tc>} {
    %c0 = arith.constant 0 : index
    %c0_0 = arith.constant 0 : index
    %0 = vector.load %arg1[%c0, %c0_0] : memref<8x37xf32, #tpu.memory_space<vmem>>, vector<8x37xf32>
    %c0_1 = arith.constant 0 : index
    %c0_2 = arith.constant 0 : index
    %1 = vector.load %arg0[%c0_1, %c0_2] : memref<37x512xf32, #tpu.memory_space<vmem>>, vector<37x512xf32>
    %cst = arith.constant dense<0.000000e+00> : vector<8x512xf32>
    %2 = tpu.matmul %0, %1, %cst {dimension_numbers = #tpu.dot_dimension_numbers<[1], [0], [0], [1], [0, 0, 1, 1], [], []>} : vector<8x37xf32>, vector<37x512xf32>, vector<8x512xf32> -> vector<8x512xf32>
    %3 = vector.extract_strided_slice %2 {offsets = [0, 0], sizes = [8, 128], strides = [1, 1]} : vector<8x512xf32> to vector<8x128xf32>
    %4 = vector.extract_strided_slice %2 {offsets = [0, 128], sizes = [8, 128], strides = [1, 1]} : vector<8x512xf32> to vector<8x128xf32>
    %5 = arith.maximumf %3, %4 : vector<8x128xf32>
    %6 = vector.extract_strided_slice %2 {offsets = [0, 256], sizes = [8, 128], strides = [1, 1]} : vector<8x512xf32> to vector<8x128xf32>
    %7 = arith.maximumf %5, %6 : vector<8x128xf32>
    %8 = vector.extract_strided_slice %2 {offsets = [0, 384], sizes = [8, 128], strides = [1, 1]} : vector<8x512xf32> to vector<8x128xf32>
    %9 = arith.maximumf %7, %8 : vector<8x128xf32>
    %cst_3 = arith.constant 0.000000e+00 : f32
    %10 = vector.broadcast %cst_3 : f32 to vector<8x128xf32>
    %11 = arith.maximumf %9, %10 : vector<8x128xf32>
    %c0_4 = arith.constant 0 : index
    %c0_5 = arith.constant 0 : index
    %12 = vector.load %arg2[%c0_4, %c0_5] : memref<8x128xf32, #tpu.memory_space<vmem>>, vector<8x128xf32>
    tpu.vector_store %arg2[%c0_4, %c0_5], %11 {strides = array<i32>} : memref<8x128xf32, #tpu.memory_space<vmem>>, vector<8x128xf32>,
    return
  }
}

</mosaic_0001>

<bundles_post_ra>
// kernel: conv_block.1
= control target key start
LH: loop header
LB: loop body
LE: loop exit
PB: predicated region body
PF: predicated region fallthrough
CT: control target
= control target key end

     0   :  { %vm36_vm0 = vcmask 1044480   ;;  %vm32_vm1 = vcmask 302080   ;;  %s227_s0 = inlined_call_operand.vmem [shape: f32[37,512], index: 0, kind: input, shape index: {}]   ;;  %s228_s1 = inlined_call_operand.vmem [shape: f32[8,37], index: 1, kind: input, shape index: {}]   ;;  %s229_s2 = inlined_call_operand.vmem [shape: f32[8,128], index: 2, kind: output, shape index: {}]  }
   0x1   :  { %v30_v0 = vld [vmem:[%s227_s0 + $0x90] sm:$0x1f]  ;;  %v31_v2 = vld [vmem:[%s227_s0 + $0x98] sm:$0x1f]  ;;  %v28_v3 = vld [vmem:[%s227_s0 + $0x80] sm:$0x1f] }
   0x2   :  { %v26_v1 = vld [vmem:[%s227_s0 + $0x70] sm:$0xff]  ;;  %142 = vmatpush.msk.msra.mxu2 %vm36_vm0, %v30_v0  ;;  %144 = vmatpush.msk.msra.mxu3 %vm36_vm0, %v31_v2  ;;  %v29_v4 = vld [vmem:[%s227_s0 + $0x88] sm:$0x1f]  ;;  %v27_v6 = vld [vmem:[%s227_s0 + $0x78] sm:$0xff] }
   0x3   :  { %v22_v5 = vld [vmem:[%s227_s0 + $0x50] sm:$0xff]  ;;  %138 = vmatpush.msk.msra.mxu0 %vm36_vm0, %v28_v3  ;;  %140 = vmatpush.msk.msra.mxu1 %vm36_vm0, %v29_v4  ;;  %v24_v7 = vld [vmem:[%s227_s0 + $0x60] sm:$0xff]  ;;  %v25_v8 = vld [vmem:[%s227_s0 + $0x68] sm:$0xff] }
   0x4   :  { %101 = vmatpush.msra.mxu2 %v26_v1  ;;  %121 = vmatpush.msra.mxu3 %v27_v6  ;;  %v23_v9 = vld [vmem:[%s227_s0 + $0x58] sm:$0xff]  ;;  %v20_v10 = vld [vmem:[%s227_s0 + $0x40] sm:$0xff]  ;;  %v18_v11 = vld [vmem:[%s227_s0 + $0x30] sm:$0xff] }
   0x5   :  { %61 = vmatpush.msra.mxu0 %v24_v7  ;;  %81 = vmatpush.msra.mxu1 %v25_v8  ;;  %v21_v12 = vld [vmem:[%s227_s0 + $0x48] sm:$0xff]  ;;  %v19_v13 = vld [vmem:[%s227_s0 + $0x38] sm:$0xff]  ;;  %v16_v14 = vld [vmem:[%s227_s0 + $0x20] sm:$0xff] }
   0x6   :  { %102 = vmatpush.msra.mxu2 %v22_v5  ;;  %122 = vmatpush.msra.mxu3 %v23_v9  ;;  %v17_v15 = vld [vmem:[%s227_s0 + $0x28] sm:$0xff]  ;;  %v14_v16 = vld [vmem:[%s227_s0 + $0x10] sm:$0xff]  ;;  %v15_v17 = vld [vmem:[%s227_s0 + $0x18] sm:$0xff] }
   0x7   :  { %62 = vmatpush.msra.mxu0 %v20_v10  ;;  %82 = vmatpush.msra.mxu1 %v21_v12  ;;  %v11_v18 = vld [vmem:[%s228_s1] sm:$0xff]  ;;  %v13_v20 = vld [vmem:[%s227_s0 + $0x8] sm:$0xff] }
   0x8   :  { %103 = vmatpush.msra.mxu2 %v18_v11  ;;  %123 = vmatpush.msra.mxu3 %v19_v13  ;;  %v12_v19 = vld [vmem:[%s227_s0] sm:$0xff] }
   0x9   :  { %63 = vmatpush.msra.mxu0 %v16_v14  ;;  %83 = vmatpush.msra.mxu1 %v17_v15 }
   0xa   :  { %104 = vmatpush.msra.mxu2 %v14_v16  ;;  %124 = vmatpush.msra.mxu3 %v15_v17 }
   0xb   :  { %143 = vmatmul.msk.f32.vlgmr.msra.gmra.mxu2 %vm32_vm1, %v11_v18  ;;  %145 = vmatmul.msk.f32.vlgmr.msra.gmra.mxu3 %vm32_vm1, %v11_v18 }
   0xc   :  { %64 = vmatpush.msra.mxu0 %v12_v19  ;;  %84 = vmatpush.msra.mxu1 %v13_v20 }
   0xd   :  { %139 = vmatmul.msk.f32.vlgmr.msra.gmra.mxu0 %vm32_vm1, %v11_v18  ;;  %141 = vmatmul.msk.f32.vlgmr.msra.gmra.mxu1 %vm32_vm1, %v11_v18 }
  0x8a   :  { %v66_v21 = vpop.f32.mrf.mxu0  ;;  %v86_v22 = vpop.f32.mrf.mxu1 }
  0x8b   :  { %v129_v23 = vmax.f32 %v66_v21, %v86_v22 }
  0x8e   :  { %v106_v24 = vpop.f32.mrf.mxu2  ;;  %v126_v25 = vpop.f32.mrf.mxu3 }
  0x8f   :  { %v130_v26 = vmax.f32 %v129_v23, %v106_v24 }
  0x91   :  { %v131_v27 = vmax.f32 %v130_v26, %v126_v25 }
  0x93   :  { %v132_v28 = vmax.f32 %v131_v27, 0.0 }
  0x95   :  { %133 = vst [vmem:[%s229_s2] sm:$0xff] %v132_v28 }

</bundles_post_ra>
